<compile_context>
chip_gen: v6e
topology: v6e:2x2x1
jax: 0.10.0
libtpu: 0.0.40
codegen_flags: <defaults>
</compile_context>

<pallas_src>
import jax
import jax.numpy as jnp
from jax.experimental import pallas as pl
from jax.experimental.pallas import tpu as pltpu


EMB = 1024
DIMS = [EMB, 512, 256, 128, 64, 1]
PAD_OUT = 128   # folded out_features 1 -> 128 lanes for the MXU
OUT_SUB = 8     # sublane-aligned output slab; only row 0 is meaningful


def _disc_kernel(x_ref, w_ref, b_ref, o_ref):
    # x_ref: (TB, 1024)  w_ref: (1024, 128)  b_ref: (1, 128)  o_ref: (8, TB)
    h = jnp.dot(x_ref[...], w_ref[...],
                preferred_element_type=jnp.float32) + b_ref[...]     # (TB, 128)
    # One XLU transpose per tile -> lane-dense scalar slab; rows 1..7 are the
    # zero-padded columns (discarded by the wrapper).
    o_ref[...] = h.T[:OUT_SUB, :].astype(o_ref.dtype)                # (8, TB)


def fold_params(params):
    """Fold the activation-free Linear stack into one padded affine map.

    params: list of (W, b) with W: (in, out), b: (1, out)  (transposed vs PyTorch).
    Returns (w_pad, b_pad): (1024, 128) and (1, 128), zero-padded past column 0.
    Done once, outside the hot path.
    """
    (w_total, b_total), *rest = params
    for w, b in rest:
        b_total = b_total @ w + b
        w_total = w_total @ w
    w_pad = jnp.zeros((EMB, PAD_OUT), jnp.float32).at[:, : w_total.shape[1]].set(w_total)
    b_pad = jnp.zeros((1, PAD_OUT), jnp.float32).at[:, : b_total.shape[1]].set(b_total)
    return w_pad, b_pad


def discriminator_emb_forward(x, folded_params, *, tb=256):
    """x: (B, 1024) float32.  folded_params: (w_pad, b_pad) from fold_params.

    Returns (B,) float32, matching output.view(-1, 1).squeeze(1).
    """
    # NOTE: on v6e/v7x, casting x/w_pad to bfloat16 (keeping f32 accumulation)
    # halves HBM traffic; kept in float32 here to match PyTorch f32 numerics.
    w_pad, b_pad = folded_params
    B = x.shape[0]

    # Tile the batch: TB rows per grid step (multiple of 8 sublanes for f32).
    TB = tb if B >= tb else max(8, ((B + 7) // 8) * 8)
    Bp = ((B + TB - 1) // TB) * TB
    if Bp != B:
        x = jnp.pad(x, ((0, Bp - B), (0, 0)))
    n_tiles = Bp // TB

    out = pl.pallas_call(
        _disc_kernel,
        out_shape=jax.ShapeDtypeStruct((OUT_SUB, Bp), jnp.float32),
        grid_spec=pltpu.PrefetchScalarGridSpec(
            num_scalar_prefetch=0,
            grid=(n_tiles,),
            in_specs=[
                pl.BlockSpec((TB, EMB), lambda i: (i, 0)),        # x tile (pipelined)
                pl.BlockSpec((EMB, PAD_OUT), lambda i: (0, 0)),   # folded W (resident)
                pl.BlockSpec((1, PAD_OUT), lambda i: (0, 0)),     # folded b (resident)
            ],
            out_specs=pl.BlockSpec((OUT_SUB, TB), lambda i: (0, i)),
        ),
        compiler_params=pltpu.CompilerParams(
            dimension_semantics=("parallel",),   # megacore-shardable batch axis
        ),
    )(x, w_pad, b_pad)

    # Row 0 holds the true scalars -> (B,), i.e. output.view(-1, 1).squeeze(1).
    return out[0, :B]


def init_params(key):
    """Deterministic synthetic init matching nn.Linear shapes (transposed to (in, out))."""
    params = []
    for i in range(5):
        fan_in, fan_out = DIMS[i], DIMS[i + 1]
        key, kw, kb = jax.random.split(key, 3)
        bound = 1.0 / (fan_in ** 0.5)
        w = jax.random.uniform(kw, (fan_in, fan_out), jnp.float32, -bound, bound)
        b = jax.random.uniform(kb, (1, fan_out), jnp.float32, -bound, bound)
        params.append((w, b))
    return params


def reference_forward(x, params):
    """Layer-by-layer pure-JAX reference (mirrors the PyTorch module)."""
    h = x
    for w, b in params:
        h = h @ w + b
    return h.reshape(-1, 1)[:, 0]


if __name__ == "__main__":
    key = jax.random.PRNGKey(0)
    kx, kp = jax.random.split(key)

    params = init_params(kp)
    folded = fold_params(params)

    # Small batch, aligned.
    B = 8
    x = jax.random.normal(kx, (B, EMB), jnp.float32)
    out = jax.block_until_ready(discriminator_emb_forward(x, folded))
    ref = reference_forward(x, params)
    assert out.shape == (B,), out.shape
    assert jnp.allclose(out, ref, atol=1e-4, rtol=1e-4), (out, ref)

    # Ragged batch (exercises the padding path).
    B2 = 13
    x2 = jax.random.normal(jax.random.PRNGKey(1), (B2, EMB), jnp.float32)
    out2 = jax.block_until_ready(discriminator_emb_forward(x2, folded))
    ref2 = reference_forward(x2, params)
    assert out2.shape == (B2,), out2.shape
    assert jnp.allclose(out2, ref2, atol=1e-4, rtol=1e-4), (out2, ref2)

    print("KERNEL_OK")
</pallas_src>

<mosaic_0001>
module attributes {stable_mosaic.version = 11 : i64} {
  func.func @_disc_kernel(%arg0: i32, %arg1: memref<8x1024xf32, #tpu.memory_space<vmem>>, %arg2: memref<1024x128xf32, #tpu.memory_space<vmem>>, %arg3: memref<1x128xf32, #tpu.memory_space<vmem>>, %arg4: memref<8x8xf32, #tpu.memory_space<vmem>>) attributes {dimension_semantics = [#tpu.dimension_semantics<parallel>], iteration_bounds = array<i64: 1>, scalar_prefetch = 0 : i64, scratch_operands = 0 : i64, tpu.core_type = #tpu.core_type<tc>, window_params = [{transform_indices = @transform_0, window_bounds = array<i64: 8, 1024>}, {pipeline_mode = #tpu.pipeline_mode<synchronous>, transform_indices = @transform_1, window_bounds = array<i64: 1024, 128>}, {pipeline_mode = #tpu.pipeline_mode<synchronous>, transform_indices = @transform_2, window_bounds = array<i64: 1, 128>}, {transform_indices = @transform_3, window_bounds = array<i64: 8, 8>}]} {
    %c0 = arith.constant 0 : index
    %c0_0 = arith.constant 0 : index
    %0 = vector.load %arg1[%c0, %c0_0] : memref<8x1024xf32, #tpu.memory_space<vmem>>, vector<8x1024xf32>
    %c0_1 = arith.constant 0 : index
    %c0_2 = arith.constant 0 : index
    %1 = vector.load %arg2[%c0_1, %c0_2] : memref<1024x128xf32, #tpu.memory_space<vmem>>, vector<1024x128xf32>
    %cst = arith.constant dense<0.000000e+00> : vector<8x128xf32>
    %2 = tpu.matmul %0, %1, %cst {dimension_numbers = #tpu.dot_dimension_numbers<[1], [0], [0], [1], [0, 0, 1, 1], [], []>} : vector<8x1024xf32>, vector<1024x128xf32>, vector<8x128xf32> -> vector<8x128xf32>
    %c0_3 = arith.constant 0 : index
    %c0_4 = arith.constant 0 : index
    %3 = vector.load %arg3[%c0_3, %c0_4] : memref<1x128xf32, #tpu.memory_space<vmem>>, vector<1x128xf32>
    %4 = vector.broadcast %3 : vector<1x128xf32> to vector<8x128xf32>
    %5 = arith.addf %2, %4 : vector<8x128xf32>
    %6 = tpu.transpose %5, [1, 0] : vector<8x128xf32> -> vector<128x8xf32>
    %7 = vector.extract_strided_slice %6 {offsets = [0, 0], sizes = [8, 8], strides = [1, 1]} : vector<128x8xf32> to vector<8x8xf32>
    %c0_5 = arith.constant 0 : index
    %c0_6 = arith.constant 0 : index
    %8 = vector.load %arg4[%c0_5, %c0_6] : memref<8x8xf32, #tpu.memory_space<vmem>>, vector<8x8xf32>
    tpu.vector_store %arg4[%c0_5, %c0_6], %7 {strides = array<i32>} : memref<8x8xf32, #tpu.memory_space<vmem>>, vector<8x8xf32>,
    return
  }
  func.func @transform_0(%arg0: i32) -> (i32, i32) {
    %c0_i32 = arith.constant 0 : i32
    %c0_i32_0 = arith.constant 0 : i32
    return %arg0, %c0_i32 : i32, i32
  }
  func.func @transform_1(%arg0: i32) -> (i32, i32) {
    %c0_i32 = arith.constant 0 : i32
    %c0_i32_0 = arith.constant 0 : i32
    %c0_i32_1 = arith.constant 0 : i32
    return %c0_i32, %c0_i32_0 : i32, i32
  }
  func.func @transform_2(%arg0: i32) -> (i32, i32) {
    %c0_i32 = arith.constant 0 : i32
    %c0_i32_0 = arith.constant 0 : i32
    %c0_i32_1 = arith.constant 0 : i32
    return %c0_i32, %c0_i32_0 : i32, i32
  }
  func.func @transform_3(%arg0: i32) -> (i32, i32) {
    %c0_i32 = arith.constant 0 : i32
    %c0_i32_0 = arith.constant 0 : i32
    return %c0_i32, %arg0 : i32, i32
  }
}

</mosaic_0001>

<bundles_post_ra>
// kernel: tpu_custom_call.1
= control target key start
LH: loop header
LB: loop body
LE: loop exit
PB: predicated region body
PF: predicated region fallthrough
CT: control target
= control target key end

     0   :  { %8 = vsyncpa [#allocation3], 0  ;;  %s764_s0 = inlined_call_operand.hbm [shape: f32[8,1024], index: 0, kind: input, shape index: {}]   ;;  %s765_s1 = inlined_call_operand.hbm [shape: f32[1024,128], index: 1, kind: input, shape index: {}]   ;;  %s766_s2 = inlined_call_operand.vmem [shape: f32[1,128], index: 2, kind: input, shape index: {}]   ;;  %s767_s3 = inlined_call_operand.hbm [shape: f32[8,8], index: 3, kind: output, shape index: {}]  }
   0x1   :  { %9 = vsyncpa [#allocation6], 0 }
   0x2   :  { %10 = vsyncpa [#allocation4], 0  ;;  %s727_s12 = smov [#allocation2]   ;;  %s728_s14 = smov [#allocation5]  }
   0x3   :  { %s17_s13 = sshll.u32 %s727_s12, 4  ;;  %s26_s15 = sshll.u32 %s728_s14, 4  ;;  %s18_s13 = int_to_ptr.vmem [resolvable:$true] %s17_s13  ;;  %s27_s15 = int_to_ptr.vmem [resolvable:$true] %s26_s15 }
   0x4   :  { %s669_s16 = scalar_lea.vmem %s18_s13, 1024  ;;  %p674_p1 = scmp.lt.s32.totalorder %s18_s13, %s18_s13 }
   0x5   :  { %p670_p0 = scmp.ne.s32.totalorder %s18_s13, %s669_s16  ;;  %p675_p2 = scmp.lt.s32.totalorder %s669_s16, %s669_s16 }
   0x7   :  { %p676_p3 = por %p675_p2, %p674_p1 }
   0x9   :  { %p677_p4 = pnand %p676_p3, %p670_p0 }
   0xb   :  { %680 = shalt.err (!%p677_p4)
}
   0xc   :  { %20 = dma.hbm_to_vmem [thread:$0]  %s764_s0, 1024, %s18_s13, [#allocation3]  }
   0xd   :  { %s689_s19 = scalar_lea.vmem %s27_s15, 16384  ;;  %p694_p6 = scmp.lt.s32.totalorder %s27_s15, %s27_s15 }
   0xe   :  { %p690_p5 = scmp.ne.s32.totalorder %s27_s15, %s689_s19  ;;  %p695_p7 = scmp.lt.s32.totalorder %s689_s19, %s689_s19 }
  0x10   :  { %p696_p8 = por %p695_p7, %p694_p6 }
  0x12   :  { %p697_p9 = pnand %p696_p8, %p690_p5 }
  0x14   :  { %700 = shalt.err (!%p697_p9)
}
  0x15   :  { %s729_s20 = smov 128   ;;  %s730_s21 = smov 8  }
  0x16   :  { %32 = dma.hbm_to_vmem [thread:$0]  %s765_s1, 16384, %s27_s15, [#allocation6], %s729_s20, %s729_s20, %s730_s21  }
  0x17   :  { %721 = dma.done.wait [#allocation3], 1024  }
  0x18   :  { %722 = vsyncadd [#allocation3], 4294966272 }
  0x19   :  { %723 = dma.done.wait [#allocation6], 16384  }
  0x1a   :  { %724 = vsyncadd [#allocation6], 4294950912  ;;  %v80_v0 = vld [vmem:[#allocation5 + $0xf8] sm:$0xff]  ;;  %v79_v4 = vld [vmem:[#allocation5 + $0xf0] sm:$0xff]  ;;  %s731_s24 = smov [#allocation7]   ;;  %vm496_vm0 = vcmask 64512  }
  0x1b   :  { %v112_v1 = vld [vmem:[#allocation5 + $0x1f8] sm:$0xff]  ;;  %515 = vmatprep.subr.mxu0 %v80_v0  ;;  %v111_v5 = vld [vmem:[#allocation5 + $0x1f0] sm:$0xff]  ;;  %v78_v8 = vld [vmem:[#allocation5 + $0xe8] sm:$0xff]  ;;  %s504_s25 = sshll.u32 %s731_s24, 4  ;;  %s505_s25 = int_to_ptr.vmem [resolvable:$true] %s504_s25 }
  0x1c   :  { %v64_v2 = vld [vmem:[#allocation5 + $0x78] sm:$0xff]  ;;  %550 = vmatprep.subr.mxu1 %v112_v1  ;;  %v63_v6 = vld [vmem:[#allocation5 + $0x70] sm:$0xff]  ;;  %v110_v9 = vld [vmem:[#allocation5 + $0x1e8] sm:$0xff]  ;;  %p706_p11 = scmp.lt.s32.totalorder %s505_s25, %s505_s25 }
  0x1d   :  { %v96_v3 = vld [vmem:[#allocation5 + $0x178] sm:$0xff]  ;;  %516 = vmatpush3.msra.mxu0 %v64_v2  ;;  %v95_v7 = vld [vmem:[#allocation5 + $0x170] sm:$0xff]  ;;  %v62_v10 = vld [vmem:[#allocation5 + $0x68] sm:$0xff] }
  0x1e   :  { %551 = vmatpush3.msra.mxu1 %v96_v3  ;;  %517 = vmatprep.subr.mxu0 %v79_v4  ;;  %v94_v11 = vld [vmem:[#allocation5 + $0x168] sm:$0xff]  ;;  %v77_v12 = vld [vmem:[#allocation5 + $0xe0] sm:$0xff]  ;;  %v76_v16 = vld [vmem:[#allocation5 + $0xd8] sm:$0xff] }
  0x1f   :  { %552 = vmatprep.subr.mxu1 %v111_v5  ;;  %518 = vmatpush3.msra.mxu0 %v63_v6  ;;  %v109_v13 = vld [vmem:[#allocation5 + $0x1e0] sm:$0xff]  ;;  %v108_v17 = vld [vmem:[#allocation5 + $0x1d8] sm:$0xff]  ;;  %v75_v20 = vld [vmem:[#allocation5 + $0xd0] sm:$0xff] }
  0x20   :  { %553 = vmatpush3.msra.mxu1 %v95_v7  ;;  %519 = vmatprep.subr.mxu0 %v78_v8  ;;  %v61_v14 = vld [vmem:[#allocation5 + $0x60] sm:$0xff]  ;;  %v60_v18 = vld [vmem:[#allocation5 + $0x58] sm:$0xff]  ;;  %v107_v21 = vld [vmem:[#allocation5 + $0x1d0] sm:$0xff] }
  0x21   :  { %554 = vmatprep.subr.mxu1 %v110_v9  ;;  %v93_v15 = vld [vmem:[#allocation5 + $0x160] sm:$0xff]  ;;  %520 = vmatpush3.msra.mxu0 %v62_v10  ;;  %v92_v19 = vld [vmem:[#allocation5 + $0x158] sm:$0xff]  ;;  %v59_v22 = vld [vmem:[#allocation5 + $0x50] sm:$0xff] }
  0x22   :  { %555 = vmatpush3.msra.mxu1 %v94_v11  ;;  %521 = vmatprep.subr.mxu0 %v77_v12  ;;  %v91_v23 = vld [vmem:[#allocation5 + $0x150] sm:$0xff]  ;;  %v74_v24 = vld [vmem:[#allocation5 + $0xc8] sm:$0xff]  ;;  %v73_v28 = vld [vmem:[#allocation5 + $0xc0] sm:$0xff] }
  0x23   :  { %556 = vmatprep.subr.mxu1 %v109_v13  ;;  %522 = vmatpush3.msra.mxu0 %v61_v14  ;;  %v106_v25 = vld [vmem:[#allocation5 + $0x1c8] sm:$0xff]  ;;  %v105_v29 = vld [vmem:[#allocation5 + $0x1c0] sm:$0xff]  ;;  %v72_v32 = vld [vmem:[#allocation5 + $0xb8] sm:$0xff] }
  0x24   :  { %557 = vmatpush3.msra.mxu1 %v93_v15  ;;  %523 = vmatprep.subr.mxu0 %v76_v16  ;;  %v58_v26 = vld [vmem:[#allocation5 + $0x48] sm:$0xff]  ;;  %v57_v30 = vld [vmem:[#allocation5 + $0x40] sm:$0xff]  ;;  %v104_v33 = vld [vmem:[#allocation5 + $0x1b8] sm:$0xff] }
  0x25   :  { %558 = vmatprep.subr.mxu1 %v108_v17  ;;  %524 = vmatpush3.msra.mxu0 %v60_v18  ;;  %v90_v27 = vld [vmem:[#allocation5 + $0x148] sm:$0xff]  ;;  %v89_v31 = vld [vmem:[#allocation5 + $0x140] sm:$0xff]  ;;  %v56_v34 = vld [vmem:[#allocation5 + $0x38] sm:$0xff] }
  0x26   :  { %559 = vmatpush3.msra.mxu1 %v92_v19  ;;  %525 = vmatprep.subr.mxu0 %v75_v20  ;;  %v88_v35 = vld [vmem:[#allocation5 + $0x138] sm:$0xff]  ;;  %v71_v36 = vld [vmem:[#allocation5 + $0xb0] sm:$0xff]  ;;  %v70_v40 = vld [vmem:[#allocation5 + $0xa8] sm:$0xff] }
  0x27   :  { %560 = vmatprep.subr.mxu1 %v107_v21  ;;  %526 = vmatpush3.msra.mxu0 %v59_v22  ;;  %v103_v37 = vld [vmem:[#allocation5 + $0x1b0] sm:$0xff]  ;;  %v102_v41 = vld [vmem:[#allocation5 + $0x1a8] sm:$0xff]  ;;  %v69_v44 = vld [vmem:[#allocation5 + $0xa0] sm:$0xff] }
  0x28   :  { %561 = vmatpush3.msra.mxu1 %v91_v23  ;;  %527 = vmatprep.subr.mxu0 %v74_v24  ;;  %v55_v38 = vld [vmem:[#allocation5 + $0x30] sm:$0xff]  ;;  %v54_v42 = vld [vmem:[#allocation5 + $0x28] sm:$0xff]  ;;  %v101_v45 = vld [vmem:[#allocation5 + $0x1a0] sm:$0xff] }
  0x29   :  { %562 = vmatprep.subr.mxu1 %v106_v25  ;;  %528 = vmatpush3.msra.mxu0 %v58_v26  ;;  %v87_v39 = vld [vmem:[#allocation5 + $0x130] sm:$0xff]  ;;  %v86_v43 = vld [vmem:[#allocation5 + $0x128] sm:$0xff]  ;;  %v53_v46 = vld [vmem:[#allocation5 + $0x20] sm:$0xff] }
  0x2a   :  { %563 = vmatpush3.msra.mxu1 %v90_v27  ;;  %529 = vmatprep.subr.mxu0 %v73_v28  ;;  %v85_v47 = vld [vmem:[#allocation5 + $0x120] sm:$0xff]  ;;  %v68_v48 = vld [vmem:[#allocation5 + $0x98] sm:$0xff]  ;;  %v67_v52 = vld [vmem:[#allocation5 + $0x90] sm:$0xff] }
  0x2b   :  { %564 = vmatprep.subr.mxu1 %v105_v29  ;;  %530 = vmatpush3.msra.mxu0 %v57_v30  ;;  %v100_v49 = vld [vmem:[#allocation5 + $0x198] sm:$0xff]  ;;  %v99_v53 = vld [vmem:[#allocation5 + $0x190] sm:$0xff]  ;;  %v66_v56 = vld [vmem:[#allocation5 + $0x88] sm:$0xff] }
  0x2c   :  { %565 = vmatpush3.msra.mxu1 %v89_v31  ;;  %531 = vmatprep.subr.mxu0 %v72_v32  ;;  %v52_v50 = vld [vmem:[#allocation5 + $0x18] sm:$0xff]  ;;  %v51_v54 = vld [vmem:[#allocation5 + $0x10] sm:$0xff]  ;;  %v98_v57 = vld [vmem:[#allocation5 + $0x188] sm:$0xff] }
  0x2d   :  { %566 = vmatprep.subr.mxu1 %v104_v33  ;;  %532 = vmatpush3.msra.mxu0 %v56_v34  ;;  %v84_v51 = vld [vmem:[#allocation5 + $0x118] sm:$0xff]  ;;  %v83_v55 = vld [vmem:[#allocation5 + $0x110] sm:$0xff]  ;;  %v50_v58 = vld [vmem:[#allocation5 + $0x8] sm:$0xff] }
  0x2e   :  { %567 = vmatpush3.msra.mxu1 %v88_v35  ;;  %533 = vmatprep.subr.mxu0 %v71_v36  ;;  %v82_v59 = vld [vmem:[#allocation5 + $0x108] sm:$0xff]  ;;  %v65_v60 = vld [vmem:[#allocation5 + $0x80] sm:$0xff]  ;;  %v44_v2 = vld [vmem:[#allocation2 + $0x18] sm:$0xff] }
  0x2f   :  { %568 = vmatprep.subr.mxu1 %v103_v37  ;;  %534 = vmatpush3.msra.mxu0 %v55_v38  ;;  %v97_v61 = vld [vmem:[#allocation5 + $0x180] sm:$0xff]  ;;  %v42_v63 = vld [vmem:[#allocation2 + $0x8] sm:$0xff]  ;;  %v144_v3 = vld [vmem:[#allocation5 + $0x2f8] sm:$0xff] }
  0x30   :  { %569 = vmatpush3.msra.mxu1 %v87_v39  ;;  %535 = vmatprep.subr.mxu0 %v70_v40  ;;  %v49_v62 = vld [vmem:[#allocation5] sm:$0xff]  ;;  %v176_v4 = vld [vmem:[#allocation5 + $0x3f8] sm:$0xff]  ;;  %v43_v5 = vld [vmem:[#allocation2 + $0x10] sm:$0xff] }
  0x31   :  { %570 = vmatprep.subr.mxu1 %v102_v41  ;;  %536 = vmatpush3.msra.mxu0 %v54_v42  ;;  %v81_v0 = vld [vmem:[#allocation5 + $0x100] sm:$0xff]  ;;  %v128_v6 = vld [vmem:[#allocation5 + $0x278] sm:$0xff]  ;;  %v143_v8 = vld [vmem:[#allocation5 + $0x2f0] sm:$0xff] }
  0x32   :  { %571 = vmatpush3.msra.mxu1 %v86_v43  ;;  %537 = vmatprep.subr.mxu0 %v69_v44  ;;  %v41_v1 = vld [vmem:[#allocation2] sm:$0xff]  ;;  %v160_v7 = vld [vmem:[#allocation5 + $0x378] sm:$0xff]  ;;  %v175_v9 = vld [vmem:[#allocation5 + $0x3f0] sm:$0xff] }
  0x33   :  { %572 = vmatprep.subr.mxu1 %v101_v45  ;;  %538 = vmatpush3.msra.mxu0 %v53_v46  ;;  %v127_v10 = vld [vmem:[#allocation5 + $0x270] sm:$0xff]  ;;  %v142_v12 = vld [vmem:[#allocation5 + $0x2e8] sm:$0xff]  ;;  %v141_v16 = vld [vmem:[#allocation5 + $0x2e0] sm:$0xff] }
  0x34   :  { %573 = vmatpush3.msra.mxu1 %v85_v47  ;;  %539 = vmatprep.subr.mxu0 %v68_v48  ;;  %v159_v11 = vld [vmem:[#allocation5 + $0x370] sm:$0xff]  ;;  %v174_v13 = vld [vmem:[#allocation5 + $0x3e8] sm:$0xff]  ;;  %v173_v17 = vld [vmem:[#allocation5 + $0x3e0] sm:$0xff] }
  0x35   :  { %574 = vmatprep.subr.mxu1 %v100_v49  ;;  %540 = vmatpush3.msra.mxu0 %v52_v50  ;;  %v126_v14 = vld [vmem:[#allocation5 + $0x268] sm:$0xff]  ;;  %v125_v18 = vld [vmem:[#allocation5 + $0x260] sm:$0xff]  ;;  %v140_v20 = vld [vmem:[#allocation5 + $0x2d8] sm:$0xff] }
  0x36   :  { %575 = vmatpush3.msra.mxu1 %v84_v51  ;;  %541 = vmatprep.subr.mxu0 %v67_v52  ;;  %v158_v15 = vld [vmem:[#allocation5 + $0x368] sm:$0xff]  ;;  %v157_v19 = vld [vmem:[#allocation5 + $0x360] sm:$0xff]  ;;  %v172_v21 = vld [vmem:[#allocation5 + $0x3d8] sm:$0xff] }
  0x37   :  { %576 = vmatprep.subr.mxu1 %v99_v53  ;;  %542 = vmatpush3.msra.mxu0 %v51_v54  ;;  %v124_v22 = vld [vmem:[#allocation5 + $0x258] sm:$0xff]  ;;  %v139_v24 = vld [vmem:[#allocation5 + $0x2d0] sm:$0xff]  ;;  %v138_v28 = vld [vmem:[#allocation5 + $0x2c8] sm:$0xff] }
  0x38   :  { %577 = vmatpush3.msra.mxu1 %v83_v55  ;;  %543 = vmatprep.subr.mxu0 %v66_v56  ;;  %v156_v23 = vld [vmem:[#allocation5 + $0x358] sm:$0xff]  ;;  %v171_v25 = vld [vmem:[#allocation5 + $0x3d0] sm:$0xff]  ;;  %v170_v29 = vld [vmem:[#allocation5 + $0x3c8] sm:$0xff] }
  0x39   :  { %578 = vmatprep.subr.mxu1 %v98_v57  ;;  %544 = vmatpush3.msra.mxu0 %v50_v58  ;;  %v123_v26 = vld [vmem:[#allocation5 + $0x250] sm:$0xff]  ;;  %v122_v30 = vld [vmem:[#allocation5 + $0x248] sm:$0xff]  ;;  %v137_v32 = vld [vmem:[#allocation5 + $0x2c0] sm:$0xff] }
  0x3a   :  { %579 = vmatpush3.msra.mxu1 %v82_v59  ;;  %545 = vmatprep.subr.mxu0 %v65_v60  ;;  %v155_v27 = vld [vmem:[#allocation5 + $0x350] sm:$0xff]  ;;  %v154_v31 = vld [vmem:[#allocation5 + $0x348] sm:$0xff]  ;;  %v169_v33 = vld [vmem:[#allocation5 + $0x3c0] sm:$0xff] }
  0x3b   :  { %580 = vmatprep.subr.mxu1 %v97_v61  ;;  %546 = vmatpush3.msra.mxu0 %v49_v62  ;;  %v121_v34 = vld [vmem:[#allocation5 + $0x240] sm:$0xff]  ;;  %v136_v36 = vld [vmem:[#allocation5 + $0x2b8] sm:$0xff]  ;;  %v135_v40 = vld [vmem:[#allocation5 + $0x2b0] sm:$0xff] }
  0x3c   :  { %248 = vmatprep.mubr.f32.mxu0 %v42_v63  ;;  %581 = vmatpush3.msra.mxu1 %v81_v0  ;;  %v153_v35 = vld [vmem:[#allocation5 + $0x340] sm:$0xff]  ;;  %v168_v37 = vld [vmem:[#allocation5 + $0x3b8] sm:$0xff]  ;;  %v167_v41 = vld [vmem:[#allocation5 + $0x3b0] sm:$0xff] }
  0x3d   :  { %249 = vmatmul.mubr.f32.vlgmr.msra.gmra.mxu0 %v41_v1  ;;  %318 = vmatprep.mubr.f32.mxu1 %v44_v2  ;;  %v120_v38 = vld [vmem:[#allocation5 + $0x238] sm:$0xff]  ;;  %v119_v42 = vld [vmem:[#allocation5 + $0x230] sm:$0xff]  ;;  %v134_v44 = vld [vmem:[#allocation5 + $0x2a8] sm:$0xff] }
  0x3e   :  { %585 = vmatprep.subr.mxu0 %v144_v3  ;;  %620 = vmatprep.subr.mxu1 %v176_v4  ;;  %v152_v39 = vld [vmem:[#allocation5 + $0x338] sm:$0xff]  ;;  %v151_v43 = vld [vmem:[#allocation5 + $0x330] sm:$0xff]  ;;  %v166_v45 = vld [vmem:[#allocation5 + $0x3a8] sm:$0xff] }
  0x3f   :  { %319 = vmatmul.mubr.f32.vlgmr.msra.gmra.mxu1 %v43_v5  ;;  %586 = vmatpush3.msra.mxu0 %v128_v6  ;;  %v118_v46 = vld [vmem:[#allocation5 + $0x228] sm:$0xff]  ;;  %v133_v48 = vld [vmem:[#allocation5 + $0x2a0] sm:$0xff]  ;;  %v132_v52 = vld [vmem:[#allocation5 + $0x298] sm:$0xff] }
  0x40   :  { %621 = vmatpush3.msra.mxu1 %v160_v7  ;;  %587 = vmatprep.subr.mxu0 %v143_v8  ;;  %v150_v47 = vld [vmem:[#allocation5 + $0x328] sm:$0xff]  ;;  %v165_v49 = vld [vmem:[#allocation5 + $0x3a0] sm:$0xff]  ;;  %v164_v53 = vld [vmem:[#allocation5 + $0x398] sm:$0xff] }
  0x41   :  { %622 = vmatprep.subr.mxu1 %v175_v9  ;;  %588 = vmatpush3.msra.mxu0 %v127_v10  ;;  %v117_v50 = vld [vmem:[#allocation5 + $0x220] sm:$0xff]  ;;  %v116_v54 = vld [vmem:[#allocation5 + $0x218] sm:$0xff]  ;;  %v131_v56 = vld [vmem:[#allocation5 + $0x290] sm:$0xff] }
  0x42   :  { %623 = vmatpush3.msra.mxu1 %v159_v11  ;;  %589 = vmatprep.subr.mxu0 %v142_v12  ;;  %v149_v51 = vld [vmem:[#allocation5 + $0x320] sm:$0xff]  ;;  %v148_v55 = vld [vmem:[#allocation5 + $0x318] sm:$0xff]  ;;  %v163_v57 = vld [vmem:[#allocation5 + $0x390] sm:$0xff] }
  0x43   :  { %624 = vmatprep.subr.mxu1 %v174_v13  ;;  %590 = vmatpush3.msra.mxu0 %v126_v14  ;;  %v115_v58 = vld [vmem:[#allocation5 + $0x210] sm:$0xff]  ;;  %v130_v60 = vld [vmem:[#allocation5 + $0x288] sm:$0xff]  ;;  %v129_v0 = vld [vmem:[#allocation5 + $0x280] sm:$0xff] }
  0x44   :  { %625 = vmatpush3.msra.mxu1 %v158_v15  ;;  %591 = vmatprep.subr.mxu0 %v141_v16  ;;  %v147_v59 = vld [vmem:[#allocation5 + $0x310] sm:$0xff]  ;;  %v162_v61 = vld [vmem:[#allocation5 + $0x388] sm:$0xff]  ;;  %v161_v1 = vld [vmem:[#allocation5 + $0x380] sm:$0xff] }
  0x45   :  { %626 = vmatprep.subr.mxu1 %v173_v17  ;;  %592 = vmatpush3.msra.mxu0 %v125_v18  ;;  %v114_v62 = vld [vmem:[#allocation5 + $0x208] sm:$0xff]  ;;  %v113_v2 = vld [vmem:[#allocation5 + $0x200] sm:$0xff]  ;;  %v48_v5 = vld [vmem:[#allocation2 + $0x38] sm:$0xff] }
  0x46   :  { %627 = vmatpush3.msra.mxu1 %v157_v19  ;;  %593 = vmatprep.subr.mxu0 %v140_v20  ;;  %v146_v63 = vld [vmem:[#allocation5 + $0x308] sm:$0xff]  ;;  %v145_v4 = vld [vmem:[#allocation5 + $0x300] sm:$0xff]  ;;  %v47_v7 = vld [vmem:[#allocation2 + $0x30] sm:$0xff] }
  0x47   :  { %628 = vmatprep.subr.mxu1 %v172_v21  ;;  %594 = vmatpush3.msra.mxu0 %v124_v22  ;;  %v46_v3 = vld [vmem:[#allocation2 + $0x28] sm:$0xff]  ;;  %v45_v6 = vld [vmem:[#allocation2 + $0x20] sm:$0xff] }
  0x48   :  { %629 = vmatpush3.msra.mxu1 %v156_v23  ;;  %595 = vmatprep.subr.mxu0 %v139_v24  ;;  %v514_v12 = vld [vmem:[%s766_s2] ss:$0 sm:$0xff]  ;;  %s701_s2 = scalar_lea.vmem %s505_s25, 128 }
  0x49   :  { %630 = vmatprep.subr.mxu1 %v171_v25  ;;  %596 = vmatpush3.msra.mxu0 %v123_v26  ;;  %p702_p10 = scmp.ne.s32.totalorder %s505_s25, %s701_s2  ;;  %p707_p12 = scmp.lt.s32.totalorder %s701_s2, %s701_s2 }
  0x4a   :  { %631 = vmatpush3.msra.mxu1 %v155_v27  ;;  %597 = vmatprep.subr.mxu0 %v138_v28 }
  0x4b   :  { %632 = vmatprep.subr.mxu1 %v170_v29  ;;  %598 = vmatpush3.msra.mxu0 %v122_v30  ;;  %p708_p13 = por %p707_p12, %p706_p11 }
  0x4c   :  { %633 = vmatpush3.msra.mxu1 %v154_v31  ;;  %599 = vmatprep.subr.mxu0 %v137_v32 }
  0x4d   :  { %634 = vmatprep.subr.mxu1 %v169_v33  ;;  %600 = vmatpush3.msra.mxu0 %v121_v34  ;;  %p709_p0 = pnand %p708_p13, %p702_p10 }
  0x4e   :  { %635 = vmatpush3.msra.mxu1 %v153_v35  ;;  %601 = vmatprep.subr.mxu0 %v136_v36 }
  0x4f   :  { %636 = vmatprep.subr.mxu1 %v168_v37  ;;  %602 = vmatpush3.msra.mxu0 %v120_v38 }
  0x50   :  { %637 = vmatpush3.msra.mxu1 %v152_v39  ;;  %603 = vmatprep.subr.mxu0 %v135_v40 }
  0x51   :  { %638 = vmatprep.subr.mxu1 %v167_v41  ;;  %604 = vmatpush3.msra.mxu0 %v119_v42 }
  0x52   :  { %639 = vmatpush3.msra.mxu1 %v151_v43  ;;  %605 = vmatprep.subr.mxu0 %v134_v44 }
  0x53   :  { %640 = vmatprep.subr.mxu1 %v166_v45  ;;  %606 = vmatpush3.msra.mxu0 %v118_v46 }
  0x54   :  { %641 = vmatpush3.msra.mxu1 %v150_v47  ;;  %607 = vmatprep.subr.mxu0 %v133_v48 }
  0x55   :  { %642 = vmatprep.subr.mxu1 %v165_v49  ;;  %608 = vmatpush3.msra.mxu0 %v117_v50 }
  0x56   :  { %643 = vmatpush3.msra.mxu1 %v149_v51  ;;  %609 = vmatprep.subr.mxu0 %v132_v52 }
  0x57   :  { %644 = vmatprep.subr.mxu1 %v164_v53  ;;  %610 = vmatpush3.msra.mxu0 %v116_v54 }
  0x58   :  { %645 = vmatpush3.msra.mxu1 %v148_v55  ;;  %611 = vmatprep.subr.mxu0 %v131_v56 }
  0x59   :  { %646 = vmatprep.subr.mxu1 %v163_v57  ;;  %612 = vmatpush3.msra.mxu0 %v115_v58 }
  0x5a   :  { %647 = vmatpush3.msra.mxu1 %v147_v59  ;;  %613 = vmatprep.subr.mxu0 %v130_v60 }
  0x5b   :  { %648 = vmatprep.subr.mxu1 %v162_v61  ;;  %614 = vmatpush3.msra.mxu0 %v114_v62 }
  0x5c   :  { %649 = vmatpush3.msra.mxu1 %v146_v63  ;;  %615 = vmatprep.subr.mxu0 %v129_v0 }
  0x5d   :  { %650 = vmatprep.subr.mxu1 %v161_v1  ;;  %616 = vmatpush3.msra.mxu0 %v113_v2 }
  0x5e   :  { %388 = vmatprep.mubr.f32.mxu0 %v46_v3  ;;  %651 = vmatpush3.msra.mxu1 %v145_v4 }
  0x5f   :  { %458 = vmatprep.mubr.f32.mxu1 %v48_v5  ;;  %389 = vmatmul.mubr.f32.vlgmr.msra.gmra.mxu0 %v45_v6 }
  0x60   :  { %459 = vmatmul.mubr.f32.vlgmr.msra.gmra.mxu1 %v47_v7 }
  0xfd   :  { %v547_v8 = vpop.f32.mrf.mxu0 }
  0xff   :  { %v582_v9 = vpop.f32.mrf.mxu1  ;;  %v548_v10 = vpop.f32.mrf.mxu0 }
 0x100   :  { %v549_v11 = vadd.f32 %v548_v10, %v547_v8 }
 0x101   :  { %v583_v13 = vpop.f32.mrf.mxu1 }
 0x102   :  { %v251_v14 = vadd.f32 %v549_v11, %v514_v12  ;;  %v584_v15 = vadd.f32 %v583_v13, %v582_v9 }
 0x104   :  { %v321_v20 = vadd.f32 %v584_v15, %v251_v14 }
 0x11f   :  { %v617_v16 = vpop.f32.mrf.mxu0 }
 0x120   :  { %v652_v17 = vpop.f32.mrf.mxu1 }
 0x121   :  { %v618_v18 = vpop.f32.mrf.mxu0 }
 0x122   :  { %v653_v19 = vpop.f32.mrf.mxu1  ;;  %v619_v21 = vadd.f32 %v618_v18, %v617_v16 }
 0x123   :  { %v654_v22 = vadd.f32 %v653_v19, %v652_v17 }
 0x124   :  { %v391_v23 = vadd.f32 %v619_v21, %v321_v20 }
 0x126   :  { %v461_v24 = vadd.f32 %v654_v22, %v391_v23 }
 0x128   :  { %464 = vxpose.xlu0.b32.start.end [1/1] (short) (narrow) %v461_v24, 8 }
 0x1a4   :  { %v480_v25 = vpop.trf.xlu0 }
 0x1a5   :  { %497 = vst.msk [vmem:[#allocation7] sm:$0xff] %vm496_vm0, %v480_v25 }
 0x1a6   :  { %712 = shalt.err (!%p709_p0)
}
 0x1a7   :  { %507 = dma.vmem_to_hbm [thread:$0]  %s505_s25, 128, %s767_s3, [#allocation4]  }
 0x1a8   :  { %725 = dma.done.wait [#allocation4], 128  }
 0x1a9   :  { %726 = vsyncadd [#allocation4], 4294967168 }
 0x1aa   :  { %511 = vsyncpa [#allocation3], 1 }
 0x1ab   :  { %512 = vsyncpa [#allocation6], 1 }
 0x1ac   :  { %513 = vsyncpa [#allocation4], 1 }

</bundles_post_ra>
